<compile_context>
chip_gen: v6e
topology: v6e:2x2x1
jax: 0.10.0
libtpu: 0.0.40
codegen_flags: <defaults>
</compile_context>

<pallas_src>
import jax
import jax.numpy as jnp
from jax.experimental import pallas as pl
from jax.experimental.pallas import tpu as pltpu

IN_F = 64          # Linear in_features
OUT_F = 32         # Linear out_features
N_PAD = 128        # lane-dense padded output width
K_ROWS_PAD = 72    # 64 weight rows + 1 bias row, padded to a sublane multiple
TILE_B = 256       # rows per grid step in the batched path


def linear_relu_kernel(x_ref, wb_ref, o_ref):
    # x_ref: (TB, 64), wb_ref: (72, 128) packed [W^T ; bias ; 0], o_ref: (TB, 128)
    x = x_ref[...]
    w = wb_ref[0:IN_F, :]                 # (64, 128) weight view
    b = wb_ref[IN_F:IN_F + 1, :]          # (1, 128) bias view (broadcast over rows)
    acc = jnp.dot(x, w, preferred_element_type=jnp.float32)
    acc = acc + b
    o_ref[...] = jnp.maximum(acc, 0.0).astype(o_ref.dtype)


def prepare_params(weight, bias):
    """Pack PyTorch-layout weight (32, 64) and bias (32,) into one (72, 128) buffer.

    Done once at parameter-load time, NOT on the per-call path.
    """
    wb = jnp.zeros((K_ROWS_PAD, N_PAD), jnp.float32)
    wb = wb.at[:IN_F, :OUT_F].set(jnp.asarray(weight, jnp.float32).T)
    wb = wb.at[IN_F, :OUT_F].set(jnp.asarray(bias, jnp.float32))
    return wb


def linear_relu(x, wb):
    B, K = x.shape
    assert K == IN_F and wb.shape == (K_ROWS_PAD, N_PAD)
    vmem = pltpu.MemorySpace.VMEM

    if B <= TILE_B:
        # Tiny/medium batch (the spec's B=1): gridless, whole arrays in VMEM.
        # Total footprint is a few tens of KB -> no pipelining overhead.
        out_p = pl.pallas_call(
            linear_relu_kernel,
            out_shape=jax.ShapeDtypeStruct((B, N_PAD), x.dtype),
            in_specs=[
                pl.BlockSpec(memory_space=vmem),   # x
                pl.BlockSpec(memory_space=vmem),   # packed weight+bias
            ],
            out_specs=pl.BlockSpec(memory_space=vmem),
        )(x, wb)
        return out_p[:, :OUT_F]

    # Batched path: grid over batch, weights resident across grid steps.
    n_blocks = pl.cdiv(B, TILE_B)
    b_pad = n_blocks * TILE_B
    x_p = jnp.pad(x, ((0, b_pad - B), (0, 0))) if b_pad != B else x
    out_p = pl.pallas_call(
        linear_relu_kernel,
        out_shape=jax.ShapeDtypeStruct((b_pad, N_PAD), x.dtype),
        grid=(n_blocks,),
        in_specs=[
            pl.BlockSpec((TILE_B, IN_F), lambda i: (i, 0)),
            pl.BlockSpec((K_ROWS_PAD, N_PAD), lambda i: (0, 0)),  # resident
        ],
        out_specs=pl.BlockSpec((TILE_B, N_PAD), lambda i: (i, 0)),
        compiler_params=pltpu.CompilerParams(
            dimension_semantics=("parallel",),
        ),
    )(x_p, wb)
    return out_p[:B, :OUT_F]


if __name__ == "__main__":
    key = jax.random.PRNGKey(0)
    kx, kw, kb, kbig = jax.random.split(key, 4)

    batch = 1

    # Deterministic parameters for nn.Linear(64, 32) (PyTorch stores (out, in)).
    weight = jax.random.uniform(kw, (OUT_F, IN_F), jnp.float32, -0.125, 0.125)
    bias = jax.random.uniform(kb, (OUT_F,), jnp.float32, -0.125, 0.125)
    wb = prepare_params(weight, bias)      # packed once, reused for every call

    # Spec input: (1, 64)
    x2 = jax.random.normal(kx, (batch, IN_F), jnp.float32)

    out = linear_relu(x2, wb)
    out = jax.block_until_ready(out)

    ref = jnp.maximum(x2 @ weight.T + bias, 0.0)
    assert out.shape == (batch, OUT_F)
    assert jnp.allclose(out, ref, atol=1e-5, rtol=1e-5)

    # Also sanity-check the batched (gridded, weight-resident) path.
    xb = jax.random.normal(kbig, (512, IN_F), jnp.float32)
    out_b = jax.block_until_ready(linear_relu(xb, wb))
    ref_b = jnp.maximum(xb @ weight.T + bias, 0.0)
    assert out_b.shape == (512, OUT_F)
    assert jnp.allclose(out_b, ref_b, atol=1e-4, rtol=1e-4)

    print("KERNEL_OK")
</pallas_src>

<mosaic_0001>
module attributes {stable_mosaic.version = 11 : i64} {
  func.func @linear_relu_kernel(%arg0: memref<1x64xf32, #tpu.memory_space<vmem>>, %arg1: memref<72x128xf32, #tpu.memory_space<vmem>>, %arg2: memref<1x128xf32, #tpu.memory_space<vmem>>) attributes {dimension_semantics = [], scalar_prefetch = 0 : i64, scratch_operands = 0 : i64, tpu.core_type = #tpu.core_type<tc>} {
    %c0 = arith.constant 0 : index
    %c0_0 = arith.constant 0 : index
    %0 = vector.load %arg0[%c0, %c0_0] : memref<1x64xf32, #tpu.memory_space<vmem>>, vector<1x64xf32>
    %c0_1 = arith.constant 0 : index
    %c0_2 = arith.constant 0 : index
    %1 = vector.load %arg1[%c0_1, %c0_2] : memref<72x128xf32, #tpu.memory_space<vmem>>, vector<64x128xf32>
    %c64 = arith.constant 64 : index
    %c0_3 = arith.constant 0 : index
    %2 = vector.load %arg1[%c64, %c0_3] : memref<72x128xf32, #tpu.memory_space<vmem>>, vector<1x128xf32>
    %cst = arith.constant dense<0.000000e+00> : vector<1x128xf32>
    %3 = tpu.matmul %0, %1, %cst {dimension_numbers = #tpu.dot_dimension_numbers<[1], [0], [0], [1], [0, 0, 1, 1], [], []>} : vector<1x64xf32>, vector<64x128xf32>, vector<1x128xf32> -> vector<1x128xf32>
    %4 = arith.addf %3, %2 : vector<1x128xf32>
    %cst_4 = arith.constant 0.000000e+00 : f32
    %5 = vector.broadcast %cst_4 : f32 to vector<1x128xf32>
    %6 = arith.maximumf %4, %5 : vector<1x128xf32>
    %c0_5 = arith.constant 0 : index
    %c0_6 = arith.constant 0 : index
    %7 = vector.load %arg2[%c0_5, %c0_6] : memref<1x128xf32, #tpu.memory_space<vmem>>, vector<1x128xf32>
    tpu.vector_store %arg2[%c0_5, %c0_6], %6 {strides = array<i32>} : memref<1x128xf32, #tpu.memory_space<vmem>>, vector<1x128xf32>,
    return
  }
}

</mosaic_0001>

<bundles_post_ra>
// kernel: tpu_custom_call.1
= control target key start
LH: loop header
LB: loop body
LE: loop exit
PB: predicated region body
PF: predicated region fallthrough
CT: control target
= control target key end

     0   :  { %7 = vsyncpa [#allocation3], 0  ;;  %s273_s0 = inlined_call_operand.hbm [shape: f32[1,64], index: 0, kind: input, shape index: {}]   ;;  %s274_s1 = inlined_call_operand.hbm [shape: f32[72,128], index: 1, kind: input, shape index: {}]   ;;  %s275_s2 = inlined_call_operand.hbm [shape: f32[1,128], index: 2, kind: output, shape index: {}]  }
   0x1   :  { %8 = vsyncpa [#allocation6], 0 }
   0x2   :  { %9 = vsyncpa [#allocation4], 0  ;;  %s242_s9 = smov [#allocation2]   ;;  %s243_s11 = smov [#allocation5]  }
   0x3   :  { %s16_s10 = sshll.u32 %s242_s9, 4  ;;  %s25_s12 = sshll.u32 %s243_s11, 4  ;;  %s17_s10 = int_to_ptr.vmem [resolvable:$true] %s16_s10  ;;  %s26_s12 = int_to_ptr.vmem [resolvable:$true] %s25_s12 }
   0x4   :  { %s184_s13 = scalar_lea.vmem %s17_s10, 16  ;;  %s188_s14 = scalar_lea.vmem %s17_s10, 32 }
   0x5   :  { %p185_p0 = scmp.ne.s32.totalorder %s17_s10, %s184_s13  ;;  %p189_p1 = scmp.lt.s32.totalorder %s17_s10, %s17_s10 }
   0x6   :  { %p190_p2 = scmp.lt.s32.totalorder %s188_s14, %s184_s13 }
   0x8   :  { %p191_p3 = por %p190_p2, %p189_p1 }
   0xa   :  { %p192_p4 = pnand %p191_p3, %p185_p0 }
   0xc   :  { %195 = shalt.err (!%p192_p4)
}
   0xd   :  { %19 = dma.hbm_to_vmem [thread:$0]  %s273_s0, 16, %s17_s10, [#allocation3]  }
   0xe   :  { %s204_s17 = scalar_lea.vmem %s26_s12, 1152  ;;  %p209_p6 = scmp.lt.s32.totalorder %s26_s12, %s26_s12 }
   0xf   :  { %p205_p5 = scmp.ne.s32.totalorder %s26_s12, %s204_s17  ;;  %p210_p7 = scmp.lt.s32.totalorder %s204_s17, %s204_s17 }
  0x11   :  { %p211_p8 = por %p210_p7, %p209_p6 }
  0x13   :  { %p212_p9 = pnand %p211_p8, %p205_p5 }
  0x15   :  { %215 = shalt.err (!%p212_p9)
}
  0x16   :  { %s244_s18 = smov 128   ;;  %s245_s19 = smov 8  }
  0x17   :  { %31 = dma.hbm_to_vmem [thread:$0]  %s274_s1, 1152, %s26_s12, [#allocation6], %s244_s18, %s244_s18, %s245_s19  }
  0x18   :  { %236 = dma.done.wait [#allocation3], 16  }
  0x19   :  { %237 = vsyncadd [#allocation3], 4294967280 }
  0x1a   :  { %238 = dma.done.wait [#allocation6], 1152  }
  0x1b   :  { %239 = vsyncadd [#allocation6], 4294966144  ;;  %v246_v0 = vmov 0.0   ;;  %vm247_vm0 = vmmov 0   ;;  %v46_v1 = vld [vmem:[#allocation5 + $0x38] sm:$0xff]  ;;  %v45_v2 = vld [vmem:[#allocation5 + $0x30] sm:$0xff] }
  0x1c   :  { %150 = vmatprep.subr.mxu0 %v246_v0  ;;  %166 = vmatprep.mubr.msk.f32.mxu0 %vm247_vm0, %v246_v0  ;;  %v44_v3 = vld [vmem:[#allocation5 + $0x28] sm:$0xff]  ;;  %v43_v4 = vld [vmem:[#allocation5 + $0x20] sm:$0xff]  ;;  %v42_v5 = vld [vmem:[#allocation5 + $0x18] sm:$0xff]  ;;  %vm48_vm1 = vcmask 523264   ;;  %s248_s0 = smov [#allocation7]  }
  0x1d   :  { %151 = vmatpush3.msra.mxu0 %v46_v1  ;;  %v41_v6 = vld [vmem:[#allocation5 + $0x10] sm:$0xff]  ;;  %v40_v7 = vld [vmem:[#allocation5 + $0x8] sm:$0xff]  ;;  %v39_v8 = vld [vmem:[#allocation5] sm:$0xff]  ;;  %s130_s1 = sshll.u32 %s248_s0, 4  ;;  %s131_s1 = int_to_ptr.vmem [resolvable:$true] %s130_s1 }
  0x1e   :  { %152 = vmatprep.subr.mxu0 %v246_v0  ;;  %v38_v9 = vld [vmem:[#allocation2] sm:$0x1]  ;;  %v47_v10 = vld [vmem:[#allocation5 + $0x40] sm:$0x1]  ;;  %s216_s22 = scalar_lea.vmem %s131_s1, 16  ;;  %s220_s23 = scalar_lea.vmem %s131_s1, 32 }
  0x1f   :  { %153 = vmatpush3.msra.mxu0 %v45_v2  ;;  %p217_p10 = scmp.ne.s32.totalorder %s131_s1, %s216_s22  ;;  %p221_p11 = scmp.lt.s32.totalorder %s131_s1, %s131_s1 }
  0x20   :  { %154 = vmatprep.subr.mxu0 %v246_v0  ;;  %p222_p12 = scmp.lt.s32.totalorder %s220_s23, %s216_s22 }
  0x21   :  { %155 = vmatpush3.msra.mxu0 %v44_v3 }
  0x22   :  { %156 = vmatprep.subr.mxu0 %v246_v0  ;;  %p223_p13 = por %p222_p12, %p221_p11 }
  0x23   :  { %157 = vmatpush3.msra.mxu0 %v43_v4 }
  0x24   :  { %158 = vmatprep.subr.mxu0 %v246_v0  ;;  %p224_p0 = pnand %p223_p13, %p217_p10 }
  0x25   :  { %159 = vmatpush3.msra.mxu0 %v42_v5 }
  0x26   :  { %160 = vmatprep.subr.mxu0 %v246_v0 }
  0x27   :  { %161 = vmatpush3.msra.mxu0 %v41_v6 }
  0x28   :  { %162 = vmatprep.subr.mxu0 %v246_v0 }
  0x29   :  { %163 = vmatpush3.msra.mxu0 %v40_v7 }
  0x2a   :  { %164 = vmatprep.subr.mxu0 %v246_v0 }
  0x2b   :  { %165 = vmatpush3.msra.mxu0 %v39_v8 }
  0x2c   :  { %167 = vmatmul.mubr.msk.f32.vlgmr.msra.gmra.mxu0 %vm48_vm1, %v38_v9 }
  0xec   :  { %v118_v11 = vpop.f32.mrf.mxu0 }
  0xed   :  { %v119_v12 = vadd.f32 %v118_v11, %v47_v10 }
  0xee   :  { %v168_v13 = vpop.f32.mrf.mxu0 }
  0xef   :  { %v122_v14 = vmax.f32 %v119_v12, 0.0 }
  0xf1   :  { %123 = vst [vmem:[#allocation7] sm:$0x1] %v122_v14 }
  0xf2   :  { %227 = shalt.err (!%p224_p0)
}
  0xf3   :  { %133 = dma.vmem_to_hbm [thread:$0]  %s131_s1, 16, %s275_s2, [#allocation4]  }
  0xf4   :  { %240 = dma.done.wait [#allocation4], 16  }
  0xf5   :  { %241 = vsyncadd [#allocation4], 4294967280 }
  0xf6   :  { %137 = vsyncpa [#allocation3], 1 }
  0xf7   :  { %138 = vsyncpa [#allocation6], 1 }
  0xf8   :  { %139 = vsyncpa [#allocation4], 1 }

</bundles_post_ra>
